<compile_context>
chip_gen: v5e
topology: v5e:2x2
jax: 0.10.0
libtpu: 0.0.40
codegen_flags: <defaults>
</compile_context>

<pallas_src>
import functools

import jax
import jax.numpy as jnp
from jax.experimental import pallas as pl
from jax.experimental.pallas import tpu as pltpu

# ---- model dims -------------------------------------------------------------
K_IN = 21 * 3            # 63 input features
H1, H2, N_OUT = 42, 21, 6
N_LANES = 128            # lane width for hidden activations / packed weights
NEG_BIG = -1e30          # bias mask for padded logit lanes -> exp() == 0 exactly

# ---- packed weight layout: one (320, 128) buffer ----------------------------
W1_R0 = 0                # rows   0: 63 = fc1 weight (63, 42); cols 42:128 zero
W2_R0 = 64               # rows  64:106 = fc2 weight (42, 21); rest of 128-row block zero
W3_R0 = 192              # rows 192:213 = fc3 weight (21, 6)
W_ROWS = 320             # 64 + 128 + 128 (multiple of 16 -> bf16-tile friendly)
B_ROWS = 8               # separate f32 bias buffer: row0=b1, row1=b2, row2=b3(+mask)


def _round_up(n, m):
    return ((n + m - 1) // m) * m


def _default_tile_b(batch):
    b8 = _round_up(max(batch, 1), 8)
    if b8 <= 512:
        return b8                                    # single small step (serving path)
    # >= 2 grid steps so ("parallel",) can shard across TensorCores (v7x megacore);
    # cap at 4096 rows (~12 MiB live VMEM) so it also fits v5e with the explicit limit.
    return min(4096, _round_up(pl.cdiv(b8, 2), 8))


# --------------------------- kernel -------------------------------------------
def _gesture_kernel(x_ref, w_ref, b_ref, o_ref):
    cdt = w_ref.dtype                                    # MXU input dtype (f32 or bf16)
    x = x_ref[...].astype(cdt)                           # (TILE_B, 63); in-kernel cast only

    w1 = w_ref[W1_R0:W1_R0 + K_IN, :]                    # (63, 128)  valid cols 0:42
    w2 = w_ref[W2_R0:W2_R0 + N_LANES, :]                 # (128, 128) valid (42, 21)
    w3 = w_ref[W3_R0:W3_R0 + N_LANES, :]                 # (128, 128) valid (21, 6)
    b1 = b_ref[0:1, :]                                   # (1, 128) f32
    b2 = b_ref[1:2, :]
    b3 = b_ref[2:3, :]                                   # lanes 6:128 hold -1e30

    # fc1 + ReLU (zero-padded weight cols / zero bias lanes -> padded lanes stay 0)
    h = jnp.dot(x, w1, preferred_element_type=jnp.float32) + b1
    h = jnp.maximum(h, 0.0)                              # (TILE_B, 128)
    # fc2 + ReLU
    h = jnp.dot(h.astype(cdt), w2, preferred_element_type=jnp.float32) + b2
    h = jnp.maximum(h, 0.0)                              # (TILE_B, 128)
    # fc3 + softmax (PyTorch nn.Softmax() on 2-D input -> dim=1); -1e30 bias on padded
    # lanes makes exp() == 0 there, so softmax over 128 lanes == softmax over 6 classes.
    logits = jnp.dot(h.astype(cdt), w3, preferred_element_type=jnp.float32) + b3
    m = jnp.max(logits, axis=-1, keepdims=True)
    e = jnp.exp(logits - m)
    r = pl.reciprocal(jnp.sum(e, axis=-1, keepdims=True), approx=True)   # EUP slot
    o_ref[...] = (e[:, :N_OUT] * r).astype(o_ref.dtype)  # lane-masked (TILE_B, 6) store


# --------------------------- packing / wrapper --------------------------------
def pack_params(params, dtype=jnp.float32):
    """Pack (w1,b1,w2,b2,w3,b3) -> (weights (320,128) in `dtype`, biases (8,128) f32)."""
    w1, b1, w2, b2, w3, b3 = params
    w = jnp.zeros((W_ROWS, N_LANES), jnp.float32)
    w = w.at[W1_R0:W1_R0 + K_IN, :H1].set(w1)
    w = w.at[W2_R0:W2_R0 + H1, :H2].set(w2)
    w = w.at[W3_R0:W3_R0 + H2, :N_OUT].set(w3)
    b = jnp.zeros((B_ROWS, N_LANES), jnp.float32)
    b = b.at[0, :H1].set(b1.reshape(-1))
    b = b.at[1, :H2].set(b2.reshape(-1))
    b = b.at[2, :].set(jnp.full((N_LANES,), NEG_BIG, jnp.float32))
    b = b.at[2, :N_OUT].set(b3.reshape(-1))
    return w.astype(dtype), b                            # biases stay f32


@functools.partial(jax.jit, static_argnames=("tile_b",))
def gesture_classifier_forward(x, w_packed, b_packed, *, tile_b=None):
    """x: (B, 21, 3). Returns (B, 6) softmax probabilities in w_packed.dtype."""
    batch = x.shape[0]
    x_flat = x.reshape(batch, K_IN)                      # nn.Flatten(): contiguous, no HBM pass

    if tile_b is None:
        tile_b = _default_tile_b(batch)
    tile_b = max(8, _round_up(min(tile_b, _round_up(batch, 8)), 8))
    grid = (pl.cdiv(batch, tile_b),)                     # ragged last block handled by Pallas

    out_dtype = w_packed.dtype
    # ~8 KiB/row budget covers double-buffered x/out, resident params, f32 intermediates.
    vmem_limit = int(min(64 * 1024 * 1024, tile_b * 8 * 1024 + 8 * 1024 * 1024))

    cost = pl.CostEstimate(
        flops=2 * batch * (K_IN * H1 + H1 * H2 + H2 * N_OUT),
        transcendentals=batch * N_LANES,
        bytes_accessed=(batch * K_IN * x.dtype.itemsize
                        + W_ROWS * N_LANES * jnp.dtype(w_packed.dtype).itemsize
                        + B_ROWS * N_LANES * 4
                        + batch * N_OUT * jnp.dtype(out_dtype).itemsize),
    )

    return pl.pallas_call(
        _gesture_kernel,
        out_shape=jax.ShapeDtypeStruct((batch, N_OUT), out_dtype),
        grid_spec=pltpu.PrefetchScalarGridSpec(
            num_scalar_prefetch=0,
            grid=grid,
            in_specs=[
                pl.BlockSpec((tile_b, K_IN), lambda i: (i, 0)),        # x tile (pipelined)
                pl.BlockSpec((W_ROWS, N_LANES), lambda i: (0, 0)),     # weights, VMEM-resident
                pl.BlockSpec((B_ROWS, N_LANES), lambda i: (0, 0)),     # f32 biases, resident
            ],
            out_specs=pl.BlockSpec((tile_b, N_OUT), lambda i: (i, 0)), # (tile_b, 6) store
        ),
        compiler_params=pltpu.CompilerParams(
            dimension_semantics=("parallel",),
            vmem_limit_bytes=vmem_limit,
        ),
        cost_estimate=cost,
    )(x_flat, w_packed, b_packed)


# --------------------------- init / reference ----------------------------------
def init_params(key):
    """Deterministic parameter init (uniform, PyTorch-Linear-style fan_in bound)."""
    def linear(key, fan_in, fan_out):
        kw, kb = jax.random.split(key)
        bound = 1.0 / jnp.sqrt(fan_in)
        w = jax.random.uniform(kw, (fan_in, fan_out), jnp.float32, -bound, bound)
        b = jax.random.uniform(kb, (1, fan_out), jnp.float32, -bound, bound)
        return w, b

    k1, k2, k3 = jax.random.split(key, 3)
    w1, b1 = linear(k1, K_IN, H1)
    w2, b2 = linear(k2, H1, H2)
    w3, b3 = linear(k3, H2, N_OUT)
    return w1, b1, w2, b2, w3, b3


def reference_forward(x, params):
    """Pure-JAX reference for correctness checking."""
    w1, b1, w2, b2, w3, b3 = params
    h = x.reshape(x.shape[0], -1)
    h = jnp.maximum(h @ w1 + b1, 0.0)
    h = jnp.maximum(h @ w2 + b2, 0.0)
    logits = h @ w3 + b3
    return jax.nn.softmax(logits, axis=-1)


# --------------------------- test -----------------------------------------------
if __name__ == "__main__":
    key = jax.random.PRNGKey(0)
    kp, kx, kb = jax.random.split(key, 3)

    params = init_params(kp)
    w_f32, b_f32 = pack_params(params, dtype=jnp.float32)

    # Small serving batch (grid = (1,), single 8-row tile).
    x = jax.random.normal(kx, (8, 21, 3), dtype=jnp.float32)
    out = jax.block_until_ready(gesture_classifier_forward(x, w_f32, b_f32))
    ref = reference_forward(x, params)
    assert out.shape == (8, 6)
    # approx reciprocal in the softmax denominator -> small relative error allowed.
    assert jnp.allclose(jnp.sum(out, axis=-1), 1.0, atol=1e-2)
    assert jnp.allclose(out, ref, atol=5e-3, rtol=0)

    # Larger batch: two "parallel" grid steps with a ragged (masked) last block.
    x_big = jax.random.normal(kb, (1000, 21, 3), dtype=jnp.float32)
    out_big = jax.block_until_ready(gesture_classifier_forward(x_big, w_f32, b_f32))
    ref_big = reference_forward(x_big, params)
    assert out_big.shape == (1000, 6)
    assert jnp.allclose(out_big, ref_big, atol=5e-3, rtol=0)

    # Odd batch exercising in-block row masking (block rows > B).
    x_odd = x_big[:9]
    out_odd = jax.block_until_ready(gesture_classifier_forward(x_odd, w_f32, b_f32))
    assert out_odd.shape == (9, 6)
    assert jnp.allclose(out_odd, ref_big[:9], atol=5e-3, rtol=0)

    # bf16 weight/output path (v6e/v7x large-batch lever); f32 accumulation + f32 biases kept.
    w_bf16, b_bf16 = pack_params(params, dtype=jnp.bfloat16)
    out_bf16 = jax.block_until_ready(gesture_classifier_forward(x_big, w_bf16, b_bf16))
    assert out_bf16.dtype == jnp.bfloat16
    assert jnp.allclose(out_bf16.astype(jnp.float32), ref_big, atol=3e-2, rtol=0)

    print("KERNEL_OK")
</pallas_src>

<mosaic_0001>
module attributes {stable_mosaic.version = 11 : i64} {
  func.func @_gesture_kernel(%arg0: i32, %arg1: memref<8x63xf32, #tpu.memory_space<vmem>>, %arg2: memref<320x128xf32, #tpu.memory_space<vmem>>, %arg3: memref<8x128xf32, #tpu.memory_space<vmem>>, %arg4: memref<8x6xf32, #tpu.memory_space<vmem>>) attributes {dimension_semantics = [#tpu.dimension_semantics<parallel>], iteration_bounds = array<i64: 1>, scalar_prefetch = 0 : i64, scratch_operands = 0 : i64, tpu.core_type = #tpu.core_type<tc>, window_params = [{transform_indices = @transform_0, window_bounds = array<i64: 8, 63>}, {pipeline_mode = #tpu.pipeline_mode<synchronous>, transform_indices = @transform_1, window_bounds = array<i64: 320, 128>}, {pipeline_mode = #tpu.pipeline_mode<synchronous>, transform_indices = @transform_2, window_bounds = array<i64: 8, 128>}, {transform_indices = @transform_3, window_bounds = array<i64: 8, 6>}]} {
    %c0 = arith.constant 0 : index
    %c0_0 = arith.constant 0 : index
    %0 = vector.load %arg1[%c0, %c0_0] : memref<8x63xf32, #tpu.memory_space<vmem>>, vector<8x63xf32>
    %c0_1 = arith.constant 0 : index
    %c0_2 = arith.constant 0 : index
    %1 = vector.load %arg2[%c0_1, %c0_2] : memref<320x128xf32, #tpu.memory_space<vmem>>, vector<63x128xf32>
    %c64 = arith.constant 64 : index
    %c0_3 = arith.constant 0 : index
    %2 = vector.load %arg2[%c64, %c0_3] : memref<320x128xf32, #tpu.memory_space<vmem>>, vector<128x128xf32>
    %c192 = arith.constant 192 : index
    %c0_4 = arith.constant 0 : index
    %3 = vector.load %arg2[%c192, %c0_4] : memref<320x128xf32, #tpu.memory_space<vmem>>, vector<128x128xf32>
    %c0_5 = arith.constant 0 : index
    %c0_6 = arith.constant 0 : index
    %4 = vector.load %arg3[%c0_5, %c0_6] : memref<8x128xf32, #tpu.memory_space<vmem>>, vector<1x128xf32>
    %c1 = arith.constant 1 : index
    %c0_7 = arith.constant 0 : index
    %5 = vector.load %arg3[%c1, %c0_7] : memref<8x128xf32, #tpu.memory_space<vmem>>, vector<1x128xf32>
    %c2 = arith.constant 2 : index
    %c0_8 = arith.constant 0 : index
    %6 = vector.load %arg3[%c2, %c0_8] : memref<8x128xf32, #tpu.memory_space<vmem>>, vector<1x128xf32>
    %cst = arith.constant dense<0.000000e+00> : vector<8x128xf32>
    %7 = tpu.matmul %0, %1, %cst {dimension_numbers = #tpu.dot_dimension_numbers<[1], [0], [0], [1], [0, 0, 1, 1], [], []>} : vector<8x63xf32>, vector<63x128xf32>, vector<8x128xf32> -> vector<8x128xf32>
    %8 = vector.broadcast %4 : vector<1x128xf32> to vector<8x128xf32>
    %9 = arith.addf %7, %8 : vector<8x128xf32>
    %cst_9 = arith.constant 0.000000e+00 : f32
    %10 = vector.broadcast %cst_9 : f32 to vector<8x128xf32>
    %11 = arith.maximumf %9, %10 : vector<8x128xf32>
    %cst_10 = arith.constant dense<0.000000e+00> : vector<8x128xf32>
    %12 = tpu.matmul %11, %2, %cst_10 {dimension_numbers = #tpu.dot_dimension_numbers<[1], [0], [0], [1], [0, 0, 1, 1], [], []>} : vector<8x128xf32>, vector<128x128xf32>, vector<8x128xf32> -> vector<8x128xf32>
    %13 = vector.broadcast %5 : vector<1x128xf32> to vector<8x128xf32>
    %14 = arith.addf %12, %13 : vector<8x128xf32>
    %cst_11 = arith.constant 0.000000e+00 : f32
    %15 = vector.broadcast %cst_11 : f32 to vector<8x128xf32>
    %16 = arith.maximumf %14, %15 : vector<8x128xf32>
    %cst_12 = arith.constant dense<0.000000e+00> : vector<8x128xf32>
    %17 = tpu.matmul %16, %3, %cst_12 {dimension_numbers = #tpu.dot_dimension_numbers<[1], [0], [0], [1], [0, 0, 1, 1], [], []>} : vector<8x128xf32>, vector<128x128xf32>, vector<8x128xf32> -> vector<8x128xf32>
    %18 = vector.broadcast %6 : vector<1x128xf32> to vector<8x128xf32>
    %19 = arith.addf %17, %18 : vector<8x128xf32>
    %cst_13 = arith.constant dense<0xFF800000> : vector<8xf32>
    %20 = vector.multi_reduction <maximumf>, %19, %cst_13 [1] : vector<8x128xf32> to vector<8xf32>
    %21 = vector.shape_cast %20 : vector<8xf32> to vector<8x1xf32>
    %22 = vector.broadcast %21 : vector<8x1xf32> to vector<8x128xf32>
    %23 = arith.subf %19, %22 : vector<8x128xf32>
    %24 = math.exp %23 : vector<8x128xf32>
    %cst_14 = arith.constant dense<0.000000e+00> : vector<8xf32>
    %25 = vector.multi_reduction <add>, %24, %cst_14 [1] : vector<8x128xf32> to vector<8xf32>
    %26 = vector.shape_cast %25 : vector<8xf32> to vector<8x1xf32>
    %27 = tpu.reciprocal %26 {approx = true} : vector<8x1xf32> -> vector<8x1xf32>
    %28 = vector.extract_strided_slice %24 {offsets = [0, 0], sizes = [8, 6], strides = [1, 1]} : vector<8x128xf32> to vector<8x6xf32>
    %29 = vector.broadcast %27 : vector<8x1xf32> to vector<8x6xf32>
    %30 = arith.mulf %28, %29 : vector<8x6xf32>
    %c0_15 = arith.constant 0 : index
    %c0_16 = arith.constant 0 : index
    %31 = vector.load %arg4[%c0_15, %c0_16] : memref<8x6xf32, #tpu.memory_space<vmem>>, vector<8x6xf32>
    tpu.vector_store %arg4[%c0_15, %c0_16], %30 {strides = array<i32>} : memref<8x6xf32, #tpu.memory_space<vmem>>, vector<8x6xf32>,
    return
  }
  func.func @transform_0(%arg0: i32) -> (i32, i32) {
    %c0_i32 = arith.constant 0 : i32
    %c0_i32_0 = arith.constant 0 : i32
    return %arg0, %c0_i32 : i32, i32
  }
  func.func @transform_1(%arg0: i32) -> (i32, i32) {
    %c0_i32 = arith.constant 0 : i32
    %c0_i32_0 = arith.constant 0 : i32
    %c0_i32_1 = arith.constant 0 : i32
    return %c0_i32, %c0_i32_0 : i32, i32
  }
  func.func @transform_2(%arg0: i32) -> (i32, i32) {
    %c0_i32 = arith.constant 0 : i32
    %c0_i32_0 = arith.constant 0 : i32
    %c0_i32_1 = arith.constant 0 : i32
    return %c0_i32, %c0_i32_0 : i32, i32
  }
  func.func @transform_3(%arg0: i32) -> (i32, i32) {
    %c0_i32 = arith.constant 0 : i32
    %c0_i32_0 = arith.constant 0 : i32
    return %arg0, %c0_i32 : i32, i32
  }
}

</mosaic_0001>

<bundles_post_ra>
// kernel: gesture_classifier_forward.1
= control target key start
LH: loop header
LB: loop body
LE: loop exit
PB: predicated region body
PF: predicated region fallthrough
CT: control target
= control target key end

     0   :  { %vm64_vm0 = vcmask 1046528   ;;  %s351_s0 = inlined_call_operand.vmem [shape: f32[8,63], index: 0, kind: input, shape index: {}]   ;;  %s352_s1 = inlined_call_operand.vmem [shape: f32[320,128], index: 1, kind: input, shape index: {}]   ;;  %s353_s2 = inlined_call_operand.vmem [shape: f32[8,128], index: 2, kind: input, shape index: {}]   ;;  %s354_s3 = inlined_call_operand.hbm [shape: f32[8,6], index: 3, kind: output, shape index: {}]  }
   0x1   :  { %v23_v0 = vld [vmem:[%s352_s1 + $0x38] sm:$0x7f]  ;;  %v22_v1 = vld [vmem:[%s352_s1 + $0x30] sm:$0xff]  ;;  %v21_v2 = vld [vmem:[%s352_s1 + $0x28] sm:$0xff] }
   0x2   :  { %159 = vmatpush.msk.msra.mxu0 %vm64_vm0, %v23_v0  ;;  %v39_v3 = vld [vmem:[%s352_s1 + $0xb8] sm:$0xff]  ;;  %v38_v4 = vld [vmem:[%s352_s1 + $0xb0] sm:$0xff]  ;;  %v20_v5 = vld [vmem:[%s352_s1 + $0x20] sm:$0xff] }
   0x3   :  { %90 = vmatpush.msra.mxu1 %v39_v3  ;;  %v37_v6 = vld [vmem:[%s352_s1 + $0xa8] sm:$0xff]  ;;  %v19_v7 = vld [vmem:[%s352_s1 + $0x18] sm:$0xff]  ;;  %v18_v8 = vld [vmem:[%s352_s1 + $0x10] sm:$0xff] }
   0x4   :  { %77 = vmatpush.msra.mxu0 %v22_v1  ;;  %v36_v9 = vld [vmem:[%s352_s1 + $0xa0] sm:$0xff] }
   0x5   :  { %91 = vmatpush.msra.mxu1 %v38_v4 }
   0x6   :  { %78 = vmatpush.msra.mxu0 %v21_v2 }
   0x7   :  { %92 = vmatpush.msra.mxu1 %v37_v6 }
   0x8   :  { %79 = vmatpush.msra.mxu0 %v20_v5 }
   0x9   :  { %8 = vsyncpa [#allocation3], 0  ;;  %v35_v10 = vld [vmem:[%s352_s1 + $0x98] sm:$0xff]  ;;  %v17_v11 = vld [vmem:[%s352_s1 + $0x8] sm:$0xff]  ;;  %93 = vmatpush.msra.mxu1 %v36_v9  ;;  %vm60_vm1 = vcmask 515072   ;;  %s150_s20 = sshll.u32 %s354_s3, 4  ;;  %s151_s20 = int_to_ptr.hbm [resolvable:$true] %s150_s20 }
   0xa   :  { %80 = vmatpush.msra.mxu0 %v19_v7  ;;  %v34_v12 = vld [vmem:[%s352_s1 + $0x90] sm:$0xff]  ;;  %v16_v13 = vld [vmem:[%s352_s1] sm:$0xff]  ;;  %v33_v15 = vld [vmem:[%s352_s1 + $0x88] sm:$0xff]  ;;  %vm141_vm2 = vcmask 48128  }
   0xb   :  { %94 = vmatpush.msra.mxu1 %v35_v10  ;;  %v15_v14 = vld [vmem:[%s351_s0] sm:$0xff]  ;;  %v31_v17 = vld [vmem:[%s352_s1 + $0x78] sm:$0xff]  ;;  %v30_v18 = vld [vmem:[%s352_s1 + $0x70] sm:$0xff] }
   0xc   :  { %81 = vmatpush.msra.mxu0 %v18_v8  ;;  %v32_v16 = vld [vmem:[%s352_s1 + $0x80] sm:$0xff]  ;;  %v29_v19 = vld [vmem:[%s352_s1 + $0x68] sm:$0xff]  ;;  %v27_v21 = vld [vmem:[%s352_s1 + $0x58] sm:$0xff] }
   0xd   :  { %95 = vmatpush.msra.mxu1 %v34_v12  ;;  %v28_v20 = vld [vmem:[%s352_s1 + $0x60] sm:$0xff]  ;;  %v26_v22 = vld [vmem:[%s352_s1 + $0x50] sm:$0xff]  ;;  %v25_v23 = vld [vmem:[%s352_s1 + $0x48] sm:$0xff] }
   0xe   :  { %82 = vmatpush.msra.mxu0 %v17_v11  ;;  %v24_v24 = vld [vmem:[%s352_s1 + $0x40] sm:$0xff]  ;;  %v55_v25 = vld [vmem:[%s352_s1 + $0x138] sm:$0xff]  ;;  %v54_v26 = vld [vmem:[%s352_s1 + $0x130] sm:$0xff] }
   0xf   :  { %96 = vmatpush.msra.mxu1 %v33_v15  ;;  %112 = vmatpush.msra.mxu2 %v55_v25  ;;  %v53_v27 = vld [vmem:[%s352_s1 + $0x128] sm:$0xff]  ;;  %v52_v28 = vld [vmem:[%s352_s1 + $0x120] sm:$0xff]  ;;  %v51_v29 = vld [vmem:[%s352_s1 + $0x118] sm:$0xff] }
  0x10   :  { %83 = vmatpush.msra.mxu0 %v16_v13  ;;  %v50_v30 = vld [vmem:[%s352_s1 + $0x110] sm:$0xff]  ;;  %v49_v31 = vld [vmem:[%s352_s1 + $0x108] sm:$0xff]  ;;  %v48_v32 = vld [vmem:[%s352_s1 + $0x100] sm:$0xff] }
  0x11   :  { %160 = vmatmul.msk.f32.vlgmr.msra.gmra.mxu0 %vm60_vm1, %v15_v14  ;;  %97 = vmatpush.msra.mxu1 %v32_v16  ;;  %v47_v33 = vld [vmem:[%s352_s1 + $0xf8] sm:$0xff]  ;;  %v46_v34 = vld [vmem:[%s352_s1 + $0xf0] sm:$0xff]  ;;  %v45_v35 = vld [vmem:[%s352_s1 + $0xe8] sm:$0xff] }
  0x12   :  { %113 = vmatpush.msra.mxu2 %v54_v26  ;;  %v44_v36 = vld [vmem:[%s352_s1 + $0xe0] sm:$0xff]  ;;  %v43_v37 = vld [vmem:[%s352_s1 + $0xd8] sm:$0xff]  ;;  %v42_v42 = vld [vmem:[%s352_s1 + $0xd0] sm:$0xff] }
  0x13   :  { %98 = vmatpush.msra.mxu1 %v31_v17  ;;  %v162_v38 = vld [vmem:[%s353_s2] ss:$0 sm:$0xff]  ;;  %v41_v43 = vld [vmem:[%s352_s1 + $0xc8] sm:$0xff]  ;;  %v163_v45 = vld [vmem:[%s353_s2 + $0x1] ss:$0 sm:$0xff] }
  0x14   :  { %114 = vmatpush.msra.mxu2 %v53_v27  ;;  %v40_v44 = vld [vmem:[%s352_s1 + $0xc0] sm:$0xff]  ;;  %s195_s1 = smov [#allocation2]  }
  0x15   :  { %99 = vmatpush.msra.mxu1 %v30_v18  ;;  %v164_v49 = vld [vmem:[%s353_s2 + $0x2] ss:$0 sm:$0xff]  ;;  %s148_s17 = sshll.u32 %s195_s1, 4  ;;  %s149_s17 = int_to_ptr.vmem [resolvable:$true] %s148_s17 }
  0x16   :  { %115 = vmatpush.msra.mxu2 %v52_v28 }
  0x17   :  { %100 = vmatpush.msra.mxu1 %v29_v19 }
  0x18   :  { %116 = vmatpush.msra.mxu2 %v51_v29 }
  0x19   :  { %101 = vmatpush.msra.mxu1 %v28_v20 }
  0x1a   :  { %117 = vmatpush.msra.mxu2 %v50_v30 }
  0x1b   :  { %102 = vmatpush.msra.mxu1 %v27_v21 }
  0x1c   :  { %118 = vmatpush.msra.mxu2 %v49_v31 }
  0x1d   :  { %103 = vmatpush.msra.mxu1 %v26_v22 }
  0x1e   :  { %119 = vmatpush.msra.mxu2 %v48_v32 }
  0x1f   :  { %104 = vmatpush.msra.mxu1 %v25_v23 }
  0x20   :  { %120 = vmatpush.msra.mxu2 %v47_v33 }
  0x21   :  { %105 = vmatpush.msra.mxu1 %v24_v24 }
  0x22   :  { %121 = vmatpush.msra.mxu2 %v46_v34 }
  0x24   :  { %122 = vmatpush.msra.mxu2 %v45_v35 }
  0x26   :  { %123 = vmatpush.msra.mxu2 %v44_v36 }
  0x28   :  { %124 = vmatpush.msra.mxu2 %v43_v37 }
  0x2a   :  { %125 = vmatpush.msra.mxu2 %v42_v42 }
  0x2c   :  { %126 = vmatpush.msra.mxu2 %v41_v43 }
  0x2e   :  { %127 = vmatpush.msra.mxu2 %v40_v44 }
  0x8e   :  { %v85_v39 = vpop.f32.mrf.mxu0 }
  0x8f   :  { %v86_v40 = vadd.f32 %v162_v38, %v85_v39 }
  0x91   :  { %v88_v41 = vmax.f32 %v86_v40, 0.0 }
  0x93   :  { %106 = vmatmul.f32.vlgmr.msra.gmra.mxu1 %v88_v41 }
 0x110   :  { %v107_v46 = vpop.f32.mrf.mxu1 }
 0x111   :  { %v108_v47 = vadd.f32 %v163_v45, %v107_v46 }
 0x113   :  { %v110_v48 = vmax.f32 %v108_v47, 0.0 }
 0x115   :  { %128 = vmatmul.f32.vlgmr.msra.gmra.mxu2 %v110_v48 }
 0x198   :  { %v129_v50 = vpop.f32.mrf.mxu2 }
 0x199   :  { %v130_v51 = vadd.f32 %v164_v49, %v129_v50 }
 0x19b   :  { %132 = vmax.xlane.f32.xlu0 %v130_v51 }
 0x20e   :  { %v133_v52 = vpop.xlane.xlu0 %132 }
 0x20f   :  { %v134_v53 = vsub.f32 %v130_v51, %v133_v52 }
 0x211   :  { %v135_v54 = vmul.f32 1.442695, %v134_v53 }
 0x213   :  { %165 = vpow2.f32 %v135_v54 }
 0x219   :  { %v166_v55 = vpop.eup %165 }
 0x21a   :  { %137 = vadd.xlane.f32.xlu0 %v166_v55 }
 0x28d   :  { %v138_v56 = vpop.xlane.xlu0 %137 }
 0x28e   :  { %167 = vrcp.f32 %v138_v56 }
 0x294   :  { %v168_v57 = vpop.eup %167 }
 0x295   :  { %v140_v58 = vmul.f32 %v168_v57, %v166_v55 }
 0x297   :  { %142 = vst.msk [vmem:[#allocation2] sm:$0xff] %vm141_vm2, %v140_v58 }
 0x298   :  { %153 = dma.vmem_to_hbm [thread:$0]  %s149_s17, 128, %s151_s20, [#allocation3]  }
 0x299   :  { %193 = dma.done.wait [#allocation3], 128  }
 0x29a   :  { %194 = vsyncadd [#allocation3], 4294967168 }
 0x29b   :  { %158 = vsyncpa [#allocation3], 1 }

</bundles_post_ra>
